<compile_context>
chip_gen: v6e
topology: v6e:2x2x1
jax: 0.10.0
libtpu: 0.0.40
codegen_flags: <defaults>
</compile_context>

<pallas_src>
import functools
import math

import jax
import jax.numpy as jnp
from jax import lax
from jax.experimental import pallas as pl
from jax.experimental.pallas import tpu as pltpu


# ---------------- Pallas kernel ----------------

def _split_cosine_kernel(x_ref, w_ref, o_ref, *, nb_proxy):
    """Fused cosine-linear + proxy reduction for one (TB, TC) output tile.

    x_ref : (TB, F)     activations, bf16 (MXU operand)
    w_ref : (P, F, TC)  proxy-major, pre-normalized weights, bf16 (K on sublanes, N on lanes)
    o_ref : (TB, TC)    proxy-reduced cosine scores, f32
    """
    x = x_ref[...]
    # Inverse L2 norm of x rows in f32 (rsqrt -> EUP slot); matches F.normalize(eps=1e-12).
    xf = x.astype(jnp.float32)
    inv_nx = lax.rsqrt(jnp.maximum(jnp.sum(xf * xf, axis=1, keepdims=True),
                                   jnp.float32(1e-24)))                      # (TB, 1)

    def cosine(p):
        raw = lax.dot_general(x, w_ref[p],
                              dimension_numbers=(((1,), (0,)), ((), ())),
                              preferred_element_type=jnp.float32)            # (TB, TC)
        return raw * inv_nx   # weight row norms are already folded into w_ref

    s = cosine(0)
    if nb_proxy == 1:
        o_ref[...] = s.astype(o_ref.dtype)
        return

    # Online (streaming) softmax-weighted sum over proxies: running max / denom / acc.
    m = s
    denom = jnp.ones_like(s)            # exp(s - m) == 1 for the first proxy
    acc = s                             # exp(s - m) * s
    for p in range(1, nb_proxy):        # small static proxy count -> unrolled
        s = cosine(p)
        m_new = jnp.maximum(m, s)
        alpha = jnp.exp(m - m_new)
        beta = jnp.exp(s - m_new)
        denom = denom * alpha + beta
        acc = acc * alpha + beta * s
        m = m_new
    # Divide on the (otherwise idle) EUP; tolerance budget is already set by bf16 operands.
    o_ref[...] = (acc * pl.reciprocal(denom, approx=True)).astype(o_ref.dtype)


# ---------------- Wrapper ----------------

def _vmem_budget_bytes():
    try:
        cap = int(pltpu.get_tpu_info().vmem_capacity_bytes)
    except Exception:
        cap = 64 << 20                       # conservative fallback (v7x per-TC VMEM)
    return max((cap * 3) // 4, 32 << 20)     # leave >=25% headroom for Mosaic scratch


def _tile_plan(B, C, F, P, x_itemsize, w_itemsize, budget):
    def need(tb, tc):
        return 2 * (tb * F * x_itemsize          # x tile (double-buffered)
                    + P * F * tc * w_itemsize    # weight tile
                    + tb * tc * 4)               # f32 output tile
    tb_cands = [B] if B <= 256 else [256, 128]
    tc_cands = [C] if C <= 512 else [512, 256, 128]
    for tc in tc_cands:                          # prefer the largest lane-dense class tile
        for tb in tb_cands:
            if need(tb, tc) <= budget:
                return tb, tc, need(tb, tc)
    # TODO(synk): for very large F the full-F contraction tile may not fit (notably v7x 64 MiB);
    # add a K (F) grid axis with an f32 accumulator scratch for that regime.
    return tb_cands[-1], tc_cands[-1], need(tb_cands[-1], tc_cands[-1])


def split_cosine_reduced(x, w_pm):
    """Proxy-reduced cosine scores, shape (B, C), f32 (no sigma scale)."""
    B, F = x.shape
    P, F2, C = w_pm.shape
    assert F2 == F
    x = x.astype(w_pm.dtype)                     # bf16 MXU operand; halves x DMA too

    budget = _vmem_budget_bytes()
    TB, TC, need = _tile_plan(B, C, F, P, x.dtype.itemsize, w_pm.dtype.itemsize, budget)
    vmem_limit = int(min(budget, max(32 << 20, 2 * need)))

    # Class axis OUTER, batch INNER: the weight tensor streams from HBM once; only the tiny
    # x tile is re-read per class tile.  Leading parallel axis = classes (v7x megacore split).
    grid = (pl.cdiv(C, TC), pl.cdiv(B, TB))
    kernel = functools.partial(_split_cosine_kernel, nb_proxy=P)
    return pl.pallas_call(
        kernel,
        out_shape=jax.ShapeDtypeStruct((B, C), jnp.float32),
        grid_spec=pltpu.PrefetchScalarGridSpec(
            num_scalar_prefetch=0,
            grid=grid,
            in_specs=[
                pl.BlockSpec((TB, F), lambda j, i: (i, 0)),
                pl.BlockSpec((P, F, TC), lambda j, i: (0, 0, j)),
            ],
            out_specs=pl.BlockSpec((TB, TC), lambda j, i: (i, j)),
        ),
        compiler_params=pltpu.CompilerParams(
            dimension_semantics=("parallel", "parallel"),
            vmem_limit_bytes=vmem_limit,
        ),
    )(x, w_pm)


# ---------------- Module ----------------

class SplitCosineLinear:
    def __init__(self, in_features, out_features1, out_features2,
                 nb_proxy=1, sigma=True, key=None, param_dtype=jnp.float32):
        self.in_features = in_features
        self.nb_proxy = nb_proxy
        self.nb_classes1 = out_features1
        self.nb_classes2 = out_features2
        self.out_features = (out_features1 + out_features2) * nb_proxy
        if key is None:
            key = jax.random.PRNGKey(0)
        k1, k2 = jax.random.split(key)
        stdv = 1.0 / math.sqrt(in_features)
        # PyTorch-layout parameters (class-major, proxies fastest) kept for state compatibility.
        self.w1 = jax.random.uniform(k1, (out_features1 * nb_proxy, in_features),
                                     param_dtype, minval=-stdv, maxval=stdv)
        self.w2 = jax.random.uniform(k2, (out_features2 * nb_proxy, in_features),
                                     param_dtype, minval=-stdv, maxval=stdv)
        # fc1/fc2 are built with sigma=False in the reference; only the outer sigma exists.
        # TODO(synk): sigma is a fixed scalar here (inference); make it a learnable param for training.
        self.sigma = jnp.float32(1.0) if sigma else None
        self._repack()

    def _repack(self):
        """Row-normalize, fold norms into weights, repack proxy-major (P, F, C), cast bf16.

        Must be re-run after any update to w1/w2 (weights are cached pre-normalized).
        """
        C = self.nb_classes1 + self.nb_classes2
        P, F = self.nb_proxy, self.in_features
        w_cat = jnp.concatenate([self.w1, self.w2], axis=0).astype(jnp.float32)   # (C*P, F)
        norms = jnp.maximum(
            jnp.sqrt(jnp.sum(w_cat * w_cat, axis=1, keepdims=True)), 1e-12)
        w_n = w_cat / norms                                                        # F.normalize
        self.w_pm = w_n.reshape(C, P, F).transpose(1, 2, 0).astype(jnp.bfloat16)   # (P, F, C)

    def __call__(self, x):
        reduced = split_cosine_reduced(x, self.w_pm)           # (B, C1+C2) f32, unscaled
        old_scores = reduced[:, :self.nb_classes1]
        new_scores = reduced[:, self.nb_classes1:]
        logits = self.sigma * reduced if self.sigma is not None else reduced
        return {
            'old_scores': old_scores,
            'new_scores': new_scores,
            'logits': logits,
        }


# ---------------- Reference (pure JAX, f32) for verification ----------------

def _ref_forward(x, w1, w2, nb_proxy, sigma):
    def norm(a):
        return a / jnp.maximum(jnp.linalg.norm(a, axis=1, keepdims=True), 1e-12)

    def red(o):
        if nb_proxy == 1:
            return o
        bs, tot = o.shape
        s = o.reshape(bs, tot // nb_proxy, nb_proxy)
        a = jax.nn.softmax(s, axis=-1)
        return (a * s).sum(-1)

    o1 = norm(x) @ norm(w1).T
    o2 = norm(x) @ norm(w2).T
    logits = sigma * red(jnp.concatenate([o1, o2], axis=1))
    return red(o1), red(o2), logits


if __name__ == "__main__":
    key = jax.random.PRNGKey(0)
    kx, kp, kx2, kp2 = jax.random.split(key, 4)

    # --- small shapes (single full-array tile, grid=(1,1)) ---
    B, F = 8, 32
    c1, c2, P = 4, 6, 2
    x = jax.random.normal(kx, (B, F), jnp.float32)
    mod = SplitCosineLinear(F, c1, c2, nb_proxy=P, sigma=True, key=kp)
    res = mod(x)
    jax.block_until_ready((res['old_scores'], res['new_scores'], res['logits']))

    old_ref, new_ref, logits_ref = _ref_forward(x, mod.w1, mod.w2, P, mod.sigma)
    assert res['old_scores'].shape == (B, c1)
    assert res['new_scores'].shape == (B, c2)
    assert res['logits'].shape == (B, c1 + c2)
    # bf16 MXU operands -> loosened tolerance vs the f32 reference (cosine values in [-1, 1]).
    assert jnp.allclose(res['old_scores'], old_ref, atol=2e-2)
    assert jnp.allclose(res['new_scores'], new_ref, atol=2e-2)
    assert jnp.allclose(res['logits'], logits_ref, atol=2e-2)

    # --- tiled grid path: class-outer/batch-inner 2x2 grid with partial last tiles ---
    B2, F2 = 384, 128
    c1b, c2b, P2 = 320, 448, 2          # C = 768 -> TC = 512 (+ partial), B = 384 -> TB = 256
    x2 = jax.random.normal(kx2, (B2, F2), jnp.float32)
    mod2 = SplitCosineLinear(F2, c1b, c2b, nb_proxy=P2, sigma=True, key=kp2)
    res2 = mod2(x2)
    jax.block_until_ready((res2['old_scores'], res2['new_scores'], res2['logits']))

    o_r, n_r, l_r = _ref_forward(x2, mod2.w1, mod2.w2, P2, mod2.sigma)
    assert jnp.allclose(res2['old_scores'], o_r, atol=2e-2)
    assert jnp.allclose(res2['new_scores'], n_r, atol=2e-2)
    assert jnp.allclose(res2['logits'], l_r, atol=2e-2)

    print("KERNEL_OK")
</pallas_src>

<mosaic_0001>
module attributes {stable_mosaic.version = 11 : i64} {
  func.func @_split_cosine_kernel(%arg0: i32, %arg1: i32, %arg2: memref<8x32xbf16, #tpu.memory_space<vmem>>, %arg3: memref<2x32x10xbf16, #tpu.memory_space<vmem>>, %arg4: memref<8x10xf32, #tpu.memory_space<vmem>>) attributes {dimension_semantics = [#tpu.dimension_semantics<parallel>, #tpu.dimension_semantics<parallel>], iteration_bounds = array<i64: 1, 1>, scalar_prefetch = 0 : i64, scratch_operands = 0 : i64, tpu.core_type = #tpu.core_type<tc>, window_params = [{transform_indices = @transform_0, window_bounds = array<i64: 8, 32>}, {transform_indices = @transform_1, window_bounds = array<i64: 2, 32, 10>}, {transform_indices = @transform_2, window_bounds = array<i64: 8, 10>}]} {
    %c0 = arith.constant 0 : index
    %c0_0 = arith.constant 0 : index
    %0 = vector.load %arg2[%c0, %c0_0] : memref<8x32xbf16, #tpu.memory_space<vmem>>, vector<8x32xbf16>
    %1 = arith.extf %0 : vector<8x32xbf16> to vector<8x32xf32>
    %2 = arith.mulf %1, %1 : vector<8x32xf32>
    %cst = arith.constant dense<0.000000e+00> : vector<8xf32>
    %3 = vector.multi_reduction <add>, %2, %cst [1] : vector<8x32xf32> to vector<8xf32>
    %4 = vector.shape_cast %3 : vector<8xf32> to vector<8x1xf32>
    %cst_1 = arith.constant 1.000000e-24 : f32
    %5 = vector.broadcast %cst_1 : f32 to vector<8x1xf32>
    %6 = arith.maximumf %4, %5 : vector<8x1xf32>
    %7 = math.rsqrt %6 : vector<8x1xf32>
    %c0_2 = arith.constant 0 : index
    %c0_3 = arith.constant 0 : index
    %c0_4 = arith.constant 0 : index
    %8 = vector.load %arg3[%c0_2, %c0_3, %c0_4] : memref<2x32x10xbf16, #tpu.memory_space<vmem>>, vector<1x32x10xbf16>
    %9 = vector.shape_cast %8 : vector<1x32x10xbf16> to vector<32x10xbf16>
    %cst_5 = arith.constant dense<0.000000e+00> : vector<8x10xf32>
    %10 = tpu.matmul %0, %9, %cst_5 {dimension_numbers = #tpu.dot_dimension_numbers<[1], [0], [0], [1], [0, 0, 1, 1], [], []>} : vector<8x32xbf16>, vector<32x10xbf16>, vector<8x10xf32> -> vector<8x10xf32>
    %11 = vector.broadcast %7 : vector<8x1xf32> to vector<8x10xf32>
    %12 = arith.mulf %10, %11 : vector<8x10xf32>
    %cst_6 = arith.constant 1.000000e+00 : f32
    %13 = vector.broadcast %cst_6 : f32 to vector<8x10xf32>
    %c1 = arith.constant 1 : index
    %c0_7 = arith.constant 0 : index
    %c0_8 = arith.constant 0 : index
    %14 = vector.load %arg3[%c1, %c0_7, %c0_8] : memref<2x32x10xbf16, #tpu.memory_space<vmem>>, vector<1x32x10xbf16>
    %15 = vector.shape_cast %14 : vector<1x32x10xbf16> to vector<32x10xbf16>
    %cst_9 = arith.constant dense<0.000000e+00> : vector<8x10xf32>
    %16 = tpu.matmul %0, %15, %cst_9 {dimension_numbers = #tpu.dot_dimension_numbers<[1], [0], [0], [1], [0, 0, 1, 1], [], []>} : vector<8x32xbf16>, vector<32x10xbf16>, vector<8x10xf32> -> vector<8x10xf32>
    %17 = vector.broadcast %7 : vector<8x1xf32> to vector<8x10xf32>
    %18 = arith.mulf %16, %17 : vector<8x10xf32>
    %19 = arith.maximumf %12, %18 : vector<8x10xf32>
    %20 = arith.subf %12, %19 : vector<8x10xf32>
    %21 = math.exp %20 : vector<8x10xf32>
    %22 = arith.subf %18, %19 : vector<8x10xf32>
    %23 = math.exp %22 : vector<8x10xf32>
    %24 = arith.mulf %13, %21 : vector<8x10xf32>
    %25 = arith.addf %24, %23 : vector<8x10xf32>
    %26 = arith.mulf %12, %21 : vector<8x10xf32>
    %27 = arith.mulf %23, %18 : vector<8x10xf32>
    %28 = arith.addf %26, %27 : vector<8x10xf32>
    %29 = tpu.reciprocal %25 {approx = true} : vector<8x10xf32> -> vector<8x10xf32>
    %30 = arith.mulf %28, %29 : vector<8x10xf32>
    %c0_10 = arith.constant 0 : index
    %c0_11 = arith.constant 0 : index
    %31 = vector.load %arg4[%c0_10, %c0_11] : memref<8x10xf32, #tpu.memory_space<vmem>>, vector<8x10xf32>
    tpu.vector_store %arg4[%c0_10, %c0_11], %30 {strides = array<i32>} : memref<8x10xf32, #tpu.memory_space<vmem>>, vector<8x10xf32>,
    return
  }
  func.func @transform_0(%arg0: i32, %arg1: i32) -> (i32, i32) {
    %c0_i32 = arith.constant 0 : i32
    %c0_i32_0 = arith.constant 0 : i32
    return %arg1, %c0_i32 : i32, i32
  }
  func.func @transform_1(%arg0: i32, %arg1: i32) -> (i32, i32, i32) {
    %c0_i32 = arith.constant 0 : i32
    %c0_i32_0 = arith.constant 0 : i32
    %c0_i32_1 = arith.constant 0 : i32
    return %c0_i32, %c0_i32_0, %arg0 : i32, i32, i32
  }
  func.func @transform_2(%arg0: i32, %arg1: i32) -> (i32, i32) {
    %c0_i32 = arith.constant 0 : i32
    return %arg1, %arg0 : i32, i32
  }
}

</mosaic_0001>

<bundles_post_ra>
// kernel: tpu_custom_call.1
= control target key start
LH: loop header
LB: loop body
LE: loop exit
PB: predicated region body
PF: predicated region fallthrough
CT: control target
= control target key end

     0   :  { %v238_v1 = vmov 0.0   ;;  %vm239_vm0 = vmmov 0   ;;  %s274_s0 = inlined_call_operand.vmem [shape: bf16[8,32], index: 0, kind: input, shape index: {}]   ;;  %s275_s1 = inlined_call_operand.vmem [shape: bf16[2,32,10], index: 1, kind: input, shape index: {}]   ;;  %s276_s2 = inlined_call_operand.hbm [shape: f32[8,10], index: 2, kind: output, shape index: {}]  }
   0x1   :  { %v204_v0 = vld [vmem:[%s275_s1 + $0x8] sm:$0xff]   ;;  %185 = vmatprep.subr.bf16.mxu0 %v238_v1  ;;  %193 = vmatprep.subr.bf16.mxu1 %v238_v1  ;;  %v205_v2 = vld [vmem:[%s275_s1 + $0x18] sm:$0xff]   ;;  %v206_v3 = vld [vmem:[%s275_s1] sm:$0xff]  }
   0x2   :  { %186 = vmatpush3.bf16.msra.mxu0 %v204_v0  ;;  %189 = vmatprep.mubr.msk.bf16.mxu0 %vm239_vm0, %v238_v1  ;;  %v207_v4 = vld [vmem:[%s275_s1 + $0x10] sm:$0xff]   ;;  %v13_v5 = vld [vmem:[%s274_s0] sm:$0xf] }
   0x3   :  { %194 = vmatpush3.bf16.msra.mxu1 %v205_v2  ;;  %187 = vmatprep.subr.bf16.mxu0 %v238_v1 }
   0x4   :  { %195 = vmatprep.subr.bf16.mxu1 %v238_v1  ;;  %197 = vmatprep.mubr.msk.bf16.mxu1 %vm239_vm0, %v238_v1 }
   0x5   :  { %7 = vsyncpa [#allocation3], 0  ;;  %v14_v6 = vunpack.c.l.bf16 %v13_v5  ;;  %vm16_vm1 = vcmask 261120   ;;  %s240_s0 = smov [#allocation2]   ;;  %vm153_vm2 = vcmask 80896  }
   0x6   :  { %188 = vmatpush3.bf16.msra.mxu0 %v206_v3  ;;  %s161_s1 = sshll.u32 %s240_s0, 4  ;;  %s162_s1 = int_to_ptr.vmem [resolvable:$true] %s161_s1 }
   0x7   :  { %196 = vmatpush3.bf16.msra.mxu1 %v207_v4  ;;  %v15_v7 = vmul.f32 %v14_v6, %v14_v6  ;;  %s216_s19 = scalar_lea.vmem %s162_s1, 128  ;;  %p221_p1 = scmp.lt.s32.totalorder %s162_s1, %s162_s1 }
   0x8   :  { %p217_p0 = scmp.ne.s32.totalorder %s162_s1, %s216_s19  ;;  %p222_p2 = scmp.lt.s32.totalorder %s216_s19, %s216_s19 }
   0x9   :  { %190 = vmatmul.mubr.msk.bf16.vlgmr.msra.gmra.mxu0 %vm16_vm1, %v13_v5  ;;  %v17_v8 = vsel %vm16_vm1, %v15_v7, 0.0 }
   0xa   :  { %198 = vmatmul.mubr.msk.bf16.vlgmr.msra.gmra.mxu1 %vm16_vm1, %v13_v5  ;;  %18 = vadd.xlane.f32.xlu0 %v17_v8  ;;  %p223_p3 = por %p222_p2, %p221_p1 }
   0xc   :  { %p224_p4 = pnand %p223_p3, %p217_p0 }
  0x93   :  { %v19_v9 = vpop.xlane.xlu0 %18 }
  0x94   :  { %v20_v10 = vmax.f32 %v19_v9, 1e-24 }
  0x96   :  { %208 = vrsqrt.f32 %v20_v10 }
  0xa3   :  { %v209_v11 = vpop.eup %208 }
  0xc9   :  { %v75_v12 = vpop.f32.mrf.mxu0 }
  0xca   :  { %v81_v13 = vmul.f32 %v209_v11, %v75_v12  ;;  %v133_v14 = vpop.f32.mrf.mxu1 }
  0xcb   :  { %v139_v15 = vmul.f32 %v209_v11, %v133_v14  ;;  %v191_v16 = vpop.f32.mrf.mxu0 }
  0xcc   :  { %v199_v17 = vpop.f32.mrf.mxu1 }
  0xcd   :  { %v140_v18 = vmax.f32 %v81_v13, %v139_v15  ;;  %v78_v19 = vpop.f32.mrf.mxu0 }
  0xce   :  { %v136_v20 = vpop.f32.mrf.mxu1 }
  0xcf   :  { %v141_v21 = vsub.f32 %v81_v13, %v140_v18  ;;  %v144_v22 = vsub.f32 %v139_v15, %v140_v18  ;;  %v192_v23 = vpop.f32.mrf.mxu0 }
  0xd0   :  { %v200_v24 = vpop.f32.mrf.mxu1 }
  0xd1   :  { %v142_v25 = vmul.f32 1.442695, %v141_v21  ;;  %v145_v26 = vmul.f32 1.442695, %v144_v22 }
  0xd3   :  { %210 = vpow2.f32 %v142_v25 }
  0xd4   :  { %212 = vpow2.f32 %v145_v26 }
  0xe0   :  { %v211_v27 = vpop.eup %210 }
  0xe1   :  { %v213_v28 = vpop.eup %212  ;;  %v148_v31 = vmul.f32 %v211_v27, %v81_v13 }
  0xe2   :  { %v147_v29 = vadd.f32 %v213_v28, %v211_v27  ;;  %v149_v30 = vmul.f32 %v213_v28, %v139_v15 }
  0xe4   :  { %214 = vrcp.f32 %v147_v29  ;;  %v150_v32 = vadd.f32 %v149_v30, %v148_v31 }
  0xf1   :  { %v215_v33 = vpop.eup %214 }
  0xf2   :  { %v152_v34 = vmul.f32 %v215_v33, %v150_v32 }
  0xf4   :  { %154 = vst.msk [vmem:[#allocation2] sm:$0xff] %vm153_vm2, %v152_v34 }
  0xf5   :  { %227 = shalt.err (!%p224_p4)
}
  0xf6   :  { %164 = dma.vmem_to_hbm [thread:$0]  %s162_s1, 128, %s276_s2, [#allocation3]  }
  0xf7   :  { %236 = dma.done.wait [#allocation3], 128  }
  0xf8   :  { %237 = vsyncadd [#allocation3], 4294967168 }
  0xf9   :  { %168 = vsyncpa [#allocation3], 1 }

</bundles_post_ra>
